<compile_context>
chip_gen: v7x
topology: tpu7x:2x2x1
jax: 0.10.0
libtpu: 0.0.40
codegen_flags: <defaults>
</compile_context>

<pallas_src>
import jax
import jax.numpy as jnp
from jax.experimental import pallas as pl
from jax.experimental.pallas import tpu as pltpu

NEG_SLOPE = 0.01  # F.leaky_relu default negative_slope


def _leaky_relu(x):
    # Equivalent to where(x>0, x, slope*x) for 0 < slope < 1, one fewer VPU op.
    return jnp.maximum(x, NEG_SLOPE * x)


def _round_up(n, m):
    return ((n + m - 1) // m) * m


def critic_kernel(x_ref, w_ref, v_ref, o_ref):
    # x_ref: (10, TB) bf16/f32 -- features on sublanes, batch on lanes.
    # w_ref: (2, 10, 10) f32   -- stacked [w1, w2].
    # v_ref: (10, 4)     f32   -- columns [b1, b2, w3_col, (b3 in row 0)].
    x = x_ref[...].astype(jnp.float32)

    w1 = w_ref[0]
    w2 = w_ref[1]
    b1 = v_ref[:, 0:1]          # (10, 1)
    b2 = v_ref[:, 1:2]          # (10, 1)
    w3 = v_ref[:, 2:3]          # (10, 1)  fc3 weight as a column
    b3 = v_ref[0:1, 3:4]        # (1, 1)

    # fc1 + leaky_relu: (10,10) @ (10,TB) -> (10,TB)
    h1 = _leaky_relu(jnp.dot(w1, x, preferred_element_type=jnp.float32) + b1)
    # fc2 + leaky_relu
    h2 = _leaky_relu(jnp.dot(w2, h1, preferred_element_type=jnp.float32) + b2)
    # fc3 (10 -> 1): VPU multiply + sublane (XLU) reduce, lane-dense (1, TB) out.
    out = jnp.sum(h2 * w3, axis=0, keepdims=True) + b3
    o_ref[...] = out.astype(o_ref.dtype)


def critic_forward(x, params, *, max_tile=32768, input_dtype=jnp.bfloat16):
    """x: (B, 10) float32 -> (B, 1) float32."""
    w_pack, v_pack = params
    B, F = x.shape
    assert F == 10, F

    # Large lane-aligned batch tiles amortize the ~0.35 us per-grid-step cost;
    # the cdiv(B, 2) term keeps >=2 grid steps when B is large (v7x megacore).
    TB = min(max_tile, _round_up(max(pl.cdiv(max(B, 1), 2), 1), 128))
    B_pad = _round_up(max(B, 1), TB)
    grid = (B_pad // TB,)

    # Single wrapper staging pass: transpose (batch -> lanes), downcast, pad.
    # XLA fuses these into one copy; bf16 halves the kernel's input HBM stream.
    x_t = jnp.pad(x.T.astype(input_dtype), ((0, 0), (0, B_pad - B)))

    out_t = pl.pallas_call(
        critic_kernel,
        out_shape=jax.ShapeDtypeStruct((1, B_pad), jnp.float32),
        grid_spec=pltpu.PrefetchScalarGridSpec(
            num_scalar_prefetch=0,
            grid=grid,
            in_specs=[
                pl.BlockSpec((F, TB), lambda i: (0, i)),        # x tile (pipelined)
                pl.BlockSpec((2, F, F), lambda i: (0, 0, 0)),   # stacked w1/w2 (resident)
                pl.BlockSpec((F, 4), lambda i: (0, 0)),         # packed b1,b2,w3,b3
            ],
            out_specs=pl.BlockSpec((1, TB), lambda i: (0, i)),  # lane-dense out
        ),
        compiler_params=pltpu.CompilerParams(
            dimension_semantics=("parallel",),
            vmem_limit_bytes=32 * 1024 * 1024,
        ),
    )(x_t, w_pack, v_pack)

    return out_t[0, :B][:, None]


def pack_params(w1, b1, w2, b2, w3, b3):
    """Pack torch-layout params into the kernel's two resident arrays."""
    w_pack = jnp.stack([w1, w2]).astype(jnp.float32)            # (2,10,10)
    v = jnp.zeros((10, 4), jnp.float32)
    v = v.at[:, 0].set(b1.reshape(10))                          # b1
    v = v.at[:, 1].set(b2.reshape(10))                          # b2
    v = v.at[:, 2].set(w3.reshape(10))                          # fc3 weight column
    v = v.at[0, 3].set(b3.reshape(())[()])                      # b3
    return (w_pack, v)


def init_params(key):
    """Deterministic init mimicking nn.Linear's uniform(-1/sqrt(fan_in), +)."""
    def linear(key, fan_in, fan_out):
        kw, kb = jax.random.split(key)
        bound = 1.0 / jnp.sqrt(jnp.float32(fan_in))
        w = jax.random.uniform(kw, (fan_out, fan_in), jnp.float32, -bound, bound)
        b = jax.random.uniform(kb, (fan_out,), jnp.float32, -bound, bound)
        return w, b

    k1, k2, k3 = jax.random.split(key, 3)
    w1, b1 = linear(k1, 10, 10)
    w2, b2 = linear(k2, 10, 10)
    w3, b3 = linear(k3, 10, 1)
    return pack_params(w1, b1, w2, b2, w3, b3)


def critic_ref(x, params, *, input_dtype=jnp.float32):
    """Pure-JAX reference of the PyTorch forward (optionally with the same
    input rounding as the kernel's HBM stream)."""
    w_pack, v = params
    w1, w2 = w_pack[0], w_pack[1]
    b1, b2 = v[:, 0], v[:, 1]
    w3, b3 = v[:, 2], v[0, 3]
    xr = x.astype(input_dtype).astype(jnp.float32)
    h = jnp.where(xr @ w1.T + b1 > 0, xr @ w1.T + b1, NEG_SLOPE * (xr @ w1.T + b1))
    h = jnp.where(h @ w2.T + b2 > 0, h @ w2.T + b2, NEG_SLOPE * (h @ w2.T + b2))
    return (h @ w3 + b3)[:, None]


if __name__ == "__main__":
    key = jax.random.PRNGKey(0)
    kx1, kx2, kp = jax.random.split(key, 3)
    params = init_params(kp)

    # Small case (single tile): batch of concat(state, action) vectors.
    B1 = 8
    x1 = jax.random.normal(kx1, (B1, 10), jnp.float32)
    out1 = jax.block_until_ready(critic_forward(x1, params))
    assert out1.shape == (B1, 1), out1.shape
    # Tight check vs. a reference using the same bf16-rounded input stream.
    ref1 = critic_ref(x1, params, input_dtype=jnp.bfloat16)
    assert jnp.allclose(out1, ref1, atol=1e-5, rtol=1e-4), "mismatch vs rounded-input reference (B=8)"
    # Looser fidelity check vs. the pure-f32 PyTorch-style forward.
    ref1_f32 = critic_ref(x1, params, input_dtype=jnp.float32)
    assert jnp.allclose(out1, ref1_f32, atol=3e-2, rtol=3e-2), "mismatch vs f32 reference (B=8)"

    # Larger case: exercises the batch grid (2 tiles) + lane padding.
    B2 = 2500
    x2 = jax.random.normal(kx2, (B2, 10), jnp.float32)
    out2 = jax.block_until_ready(critic_forward(x2, params))
    assert out2.shape == (B2, 1), out2.shape
    ref2 = critic_ref(x2, params, input_dtype=jnp.bfloat16)
    assert jnp.allclose(out2, ref2, atol=1e-5, rtol=1e-4), "mismatch vs rounded-input reference (B=2500)"

    print("KERNEL_OK")
</pallas_src>

<mosaic_0001>
module attributes {stable_mosaic.version = 11 : i64} {
  func.func @critic_kernel(%arg0: i32, %arg1: memref<10x128xbf16, #tpu.memory_space<vmem>>, %arg2: memref<2x10x10xf32, #tpu.memory_space<vmem>>, %arg3: memref<10x4xf32, #tpu.memory_space<vmem>>, %arg4: memref<1x128xf32, #tpu.memory_space<vmem>>) attributes {dimension_semantics = [#tpu.dimension_semantics<parallel>], iteration_bounds = array<i64: 1>, scalar_prefetch = 0 : i64, scratch_operands = 0 : i64, tpu.core_type = #tpu.core_type<tc>, window_params = [{transform_indices = @transform_0, window_bounds = array<i64: 10, 128>}, {pipeline_mode = #tpu.pipeline_mode<synchronous>, transform_indices = @transform_1, window_bounds = array<i64: 2, 10, 10>}, {pipeline_mode = #tpu.pipeline_mode<synchronous>, transform_indices = @transform_2, window_bounds = array<i64: 10, 4>}, {transform_indices = @transform_3, window_bounds = array<i64: 1, 128>}]} {
    %c0 = arith.constant 0 : index
    %c0_0 = arith.constant 0 : index
    %0 = vector.load %arg1[%c0, %c0_0] : memref<10x128xbf16, #tpu.memory_space<vmem>>, vector<10x128xbf16>
    %1 = arith.extf %0 : vector<10x128xbf16> to vector<10x128xf32>
    %c0_1 = arith.constant 0 : index
    %c0_2 = arith.constant 0 : index
    %c0_3 = arith.constant 0 : index
    %2 = vector.load %arg2[%c0_1, %c0_2, %c0_3] : memref<2x10x10xf32, #tpu.memory_space<vmem>>, vector<1x10x10xf32>
    %3 = vector.shape_cast %2 : vector<1x10x10xf32> to vector<10x10xf32>
    %c1 = arith.constant 1 : index
    %c0_4 = arith.constant 0 : index
    %c0_5 = arith.constant 0 : index
    %4 = vector.load %arg2[%c1, %c0_4, %c0_5] : memref<2x10x10xf32, #tpu.memory_space<vmem>>, vector<1x10x10xf32>
    %5 = vector.shape_cast %4 : vector<1x10x10xf32> to vector<10x10xf32>
    %c0_6 = arith.constant 0 : index
    %c0_7 = arith.constant 0 : index
    %6 = vector.load %arg3[%c0_6, %c0_7] : memref<10x4xf32, #tpu.memory_space<vmem>>, vector<10x1xf32>
    %c0_8 = arith.constant 0 : index
    %c1_9 = arith.constant 1 : index
    %7 = vector.load %arg3[%c0_8, %c1_9] : memref<10x4xf32, #tpu.memory_space<vmem>>, vector<10x1xf32>
    %c0_10 = arith.constant 0 : index
    %c2 = arith.constant 2 : index
    %8 = vector.load %arg3[%c0_10, %c2] : memref<10x4xf32, #tpu.memory_space<vmem>>, vector<10x1xf32>
    %c0_11 = arith.constant 0 : index
    %c3 = arith.constant 3 : index
    %9 = vector.load %arg3[%c0_11, %c3] : memref<10x4xf32, #tpu.memory_space<vmem>>, vector<1x1xf32>
    %cst = arith.constant dense<0.000000e+00> : vector<10x128xf32>
    %10 = tpu.matmul %3, %1, %cst {dimension_numbers = #tpu.dot_dimension_numbers<[1], [0], [0], [1], [0, 0, 1, 1], [], []>} : vector<10x10xf32>, vector<10x128xf32>, vector<10x128xf32> -> vector<10x128xf32>
    %11 = vector.broadcast %6 : vector<10x1xf32> to vector<10x128xf32>
    %12 = arith.addf %10, %11 : vector<10x128xf32>
    %cst_12 = arith.constant 0.00999999977 : f32
    %13 = vector.broadcast %cst_12 : f32 to vector<10x128xf32>
    %14 = arith.mulf %13, %12 : vector<10x128xf32>
    %15 = arith.maximumf %12, %14 : vector<10x128xf32>
    %cst_13 = arith.constant dense<0.000000e+00> : vector<10x128xf32>
    %16 = tpu.matmul %5, %15, %cst_13 {dimension_numbers = #tpu.dot_dimension_numbers<[1], [0], [0], [1], [0, 0, 1, 1], [], []>} : vector<10x10xf32>, vector<10x128xf32>, vector<10x128xf32> -> vector<10x128xf32>
    %17 = vector.broadcast %7 : vector<10x1xf32> to vector<10x128xf32>
    %18 = arith.addf %16, %17 : vector<10x128xf32>
    %cst_14 = arith.constant 0.00999999977 : f32
    %19 = vector.broadcast %cst_14 : f32 to vector<10x128xf32>
    %20 = arith.mulf %19, %18 : vector<10x128xf32>
    %21 = arith.maximumf %18, %20 : vector<10x128xf32>
    %22 = vector.broadcast %8 : vector<10x1xf32> to vector<10x128xf32>
    %23 = arith.mulf %21, %22 : vector<10x128xf32>
    %cst_15 = arith.constant dense<0.000000e+00> : vector<128xf32>
    %24 = vector.multi_reduction <add>, %23, %cst_15 [0] : vector<10x128xf32> to vector<128xf32>
    %25 = vector.shape_cast %24 : vector<128xf32> to vector<1x128xf32>
    %26 = vector.broadcast %9 : vector<1x1xf32> to vector<1x128xf32>
    %27 = arith.addf %25, %26 : vector<1x128xf32>
    %c0_16 = arith.constant 0 : index
    %c0_17 = arith.constant 0 : index
    %28 = vector.load %arg4[%c0_16, %c0_17] : memref<1x128xf32, #tpu.memory_space<vmem>>, vector<1x128xf32>
    tpu.vector_store %arg4[%c0_16, %c0_17], %27 {strides = array<i32>} : memref<1x128xf32, #tpu.memory_space<vmem>>, vector<1x128xf32>,
    return
  }
  func.func @transform_0(%arg0: i32) -> (i32, i32) {
    %c0_i32 = arith.constant 0 : i32
    %c0_i32_0 = arith.constant 0 : i32
    return %c0_i32, %arg0 : i32, i32
  }
  func.func @transform_1(%arg0: i32) -> (i32, i32, i32) {
    %c0_i32 = arith.constant 0 : i32
    %c0_i32_0 = arith.constant 0 : i32
    %c0_i32_1 = arith.constant 0 : i32
    %c0_i32_2 = arith.constant 0 : i32
    return %c0_i32, %c0_i32_0, %c0_i32_1 : i32, i32, i32
  }
  func.func @transform_2(%arg0: i32) -> (i32, i32) {
    %c0_i32 = arith.constant 0 : i32
    %c0_i32_0 = arith.constant 0 : i32
    %c0_i32_1 = arith.constant 0 : i32
    return %c0_i32, %c0_i32_0 : i32, i32
  }
  func.func @transform_3(%arg0: i32) -> (i32, i32) {
    %c0_i32 = arith.constant 0 : i32
    %c0_i32_0 = arith.constant 0 : i32
    return %c0_i32, %arg0 : i32, i32
  }
}

</mosaic_0001>

<bundles_post_ra>
// kernel: tpu_custom_call.1
= control target key start
LH: loop header
LB: loop body
LE: loop exit
PB: predicated region body
PF: predicated region fallthrough
CT: control target
= control target key end

     0   :  { %vm44_vm0 = vcmask 1041408   ;;  %vm343_vm1 = vmmov 1   ;;  %vm37_vm3 = vcmask 80896   ;;  %v344_v3 = vmov 0   ;;  %s423_s0 = inlined_call_operand.vmem [shape: bf16[10,128], index: 0, kind: input, shape index: {}]   ;;  %s424_s1 = inlined_call_operand.vmem [shape: f32[2,10,10], index: 1, kind: input, shape index: {}]   ;;  %s425_s2 = inlined_call_operand.vmem [shape: f32[10,4], index: 2, kind: input, shape index: {}]   ;;  %s426_s3 = inlined_call_operand.hbm [shape: f32[1,128], index: 3, kind: output, shape index: {}]  }
   0x1   :  { %v318_v0 = vld [vmem:[%s423_s0] sm:$0x1f]   ;;  %vm373_vm2 = vmpackc.low %vm44_vm0, %vm343_vm1  ;;  %312 = vset.pattern.permute.xlu0 %v344_v3 }
   0x2   :  { %v19_v2 = vld [vmem:[%s424_s1] sm:$0xff]  ;;  %294 = vmatprep.subr.msk.bf16.mxu0 %vm373_vm2, %v318_v0 }
   0x3   :  { %282 = vmatprep.mubr.msk.f32.mxu0 %vm37_vm3, %v19_v2  ;;  %v24_v4 = vld [vmem:[%s425_s2] sm:$0xff] }
   0x4   :  { %29 = vperm.xlu0 %312, %v24_v4  }
   0x5   :  { %8 = vsyncpa [#allocation3], 0  ;;  %297 = vmatpush3.bf16.msk.msra.mxu0 %vm373_vm2, %v318_v0  ;;  %v20_v5 = vld [vmem:[%s424_s1 + $0x8] sm:$0x3]  ;;  %v262_v7 = vld [vmem:[%s424_s1 + $0x10] sm:$0xff]  ;;  %v345_v8 = vmov 1  }
   0x6   :  { %v25_v6 = vld [vmem:[%s425_s2 + $0x8] sm:$0x3]  ;;  %289 = vmatprep.mubr.msk.f32.mxu1 %vm37_vm3, %v262_v7  ;;  %313 = vset.pattern.permute.xlu1 %v345_v8  ;;  %v346_v9 = vmov 2   ;;  %v347_v10 = vmov 3   ;;  %v26_v11 = vld [vmem:[%s425_s2] sm:$0x1] }
   0x7   :  { %132 = vperm.xlu1 %313, %v25_v6   ;;  %v263_v23 = vld [vmem:[%s424_s1 + $0x18] sm:$0x3]  ;;  %s348_s1 = smov [#allocation2]  }
   0x8   :  { %283 = vmatmul.mubr.msk.f32.vlgmr.msra.gmra.mrb[0].mxu0 %vm37_vm3, %v20_v5  ;;  %34 = vperm.xlu0 %312, %v25_v6   ;;  %s254_s26 = sshll.u32 %s348_s1, 4  ;;  %s255_s26 = int_to_ptr.vmem [resolvable:$true] %s254_s26 }
   0x9   :  { %s319_s27 = scalar_lea.vmem %s255_s26, 16  ;;  %s323_s28 = scalar_lea.vmem %s255_s26, 32 }
   0xa   :  { %p320_p0 = scmp.ne.s32.totalorder %s255_s26, %s319_s27  ;;  %p324_p1 = scmp.lt.s32.totalorder %s255_s26, %s255_s26 }
   0xb   :  { %128 = vperm.xlu1 %313, %v24_v4   ;;  %p325_p2 = scmp.lt.s32.totalorder %s323_s28, %s319_s27 }
   0xc   :  { %314 = vset.pattern.permute.xlu0 %v346_v9 }
   0xd   :  { %228 = vperm.xlu0 %314, %v25_v6   ;;  %p326_p3 = por %p325_p2, %p324_p1 }
   0xf   :  { %315 = vset.pattern.permute.xlu1 %v346_v9  ;;  %p327_p4 = pnand %p326_p3, %p320_p0 }
  0x10   :  { %224 = vperm.xlu1 %315, %v24_v4  }
  0x11   :  { %317 = vset.pattern.permute.xlu0 %v347_v10 }
  0x14   :  { %316 = vset.pattern.permute.xlu1 %v347_v10 }
  0x15   :  { %243 = vperm.xlu1 %316, %v26_v11  }
  0x83   :  { %v30_v12 = vpop.permute.xlu0 %29 }
  0x86   :  { %v133_v24 = vpop.permute.xlu1 %132 }
  0x87   :  { %v35_v13 = vpop.permute.xlu0 %34 }
  0x8a   :  { %v129_v26 = vpop.permute.xlu1 %128 }
  0x8c   :  { %v229_v32 = vpop.permute.xlu0 %228 }
  0x8f   :  { %v225_v34 = vpop.permute.xlu1 %224 }
  0x94   :  { %v244_v45 = vpop.permute.xlu1 %243 }
  0xdb   :  { %v284_v14 = vpop.f32.mrb[0].mxu0 }
  0xdc   :  { %v120_v15 = vadd.f32 %v284_v14, %v35_v13  ;;  %v114_v16 = vpop.f32.mrb[1].mxu0 }
  0xdd   :  { %v115_v17 = vadd.f32 %v114_v16, %v30_v12 }
  0xde   :  { %v124_v18 = vmul.f32 0.01, %v120_v15 }
  0xdf   :  { %v123_v19 = vmul.f32 0.01, %v115_v17 }
  0xe0   :  { %v126_v20 = vmax.f32 %v120_v15, %v124_v18 }
  0xe1   :  { %v125_v21 = vmax.f32 %v115_v17, %v123_v19 }
  0xe3   :  { %v298_v22 = vpack.c.bf16 %v126_v20, %v125_v21 }
  0xe5   :  { %300 = vmatprep.subr.msk.bf16.mxu1 %vm373_vm2, %v298_v22 }
  0xe6   :  { %303 = vmatpush3.bf16.msk.msra.mxu1 %vm373_vm2, %v298_v22 }
  0xe9   :  { %290 = vmatmul.mubr.msk.f32.vlgmr.msra.gmra.mrb[0].mxu1 %vm37_vm3, %v263_v23 }
 0x1bc   :  { %v291_v25 = vpop.f32.mrb[0].mxu1 }
 0x1bd   :  { %v216_v27 = vadd.f32 %v291_v25, %v133_v24  ;;  %v210_v28 = vpop.f32.mrb[1].mxu1 }
 0x1be   :  { %v211_v29 = vadd.f32 %v210_v28, %v129_v26 }
 0x1bf   :  { %v220_v30 = vmul.f32 0.01, %v216_v27 }
 0x1c0   :  { %v219_v31 = vmul.f32 0.01, %v211_v29 }
 0x1c1   :  { %v222_v33 = vmax.f32 %v216_v27, %v220_v30 }
 0x1c2   :  { %v221_v35 = vmax.f32 %v211_v29, %v219_v31 }
 0x1c3   :  { %v232_v36 = vmul.f32 %v229_v32, %v222_v33 }
 0x1c4   :  { %v231_v37 = vmul.f32 %v225_v34, %v221_v35 }
 0x1c5   :  { %v233_v38 = vsel %vm44_vm0, %v232_v36, 0.0 }
 0x1c6   :  { %v234_v39 = vadd.f32 %v233_v38, %v231_v37 }
 0x1c8   :  { %v235_v40 = vrot.slane %v234_v39, 4 }
 0x1ca   :  { %v236_v41 = vadd.f32 %v235_v40, %v234_v39 }
 0x1cc   :  { %v237_v42 = vrot.slane %v236_v41, 2 }
 0x1ce   :  { %v238_v43 = vadd.f32 %v237_v42, %v236_v41 }
 0x1d0   :  { %v239_v44 = vrot.slane %v238_v43, 1 }
 0x1d2   :  { %v240_v46 = vadd.f32 %v239_v44, %v238_v43 }
 0x1d4   :  { %v246_v47 = vadd.f32 %v244_v45, %v240_v46 }
 0x1d6   :  { %247 = vst [vmem:[#allocation2] sm:$0x1] %v246_v47 }
 0x1d7   :  { %330 = shalt.err (!%p327_p4)
}
 0x1d8   :  { %s331_s4 = scalar_lea.hbm %s426_s3, 16 }
 0x1d9   :  { %p332_p5 = scmp.ne.s32.totalorder %s426_s3, %s331_s4  ;;  %p335_p6 = scmp.lt.u32.totalorder %s331_s4, %s426_s3 }
 0x1db   :  { %p337_p7 = pnand %p335_p6, %p332_p5 }
 0x1dd   :  { %340 = shalt.err (!%p337_p7)
}
 0x1de   :  { %257 = dma.vmem_to_hbm [thread:$0]  %s255_s26, 16, %s426_s3, [#allocation3]  }
 0x1df   :  { %341 = dma.done.wait [#allocation3], 16  }
 0x1e0   :  { %342 = vsyncadd [#allocation3], 4294967280 }
 0x1e1   :  { %261 = vsyncpa [#allocation3], 1 }

</bundles_post_ra>
